<compile_context>
chip_gen: v5e
topology: v5e:2x2
jax: 0.10.0
libtpu: 0.0.40
codegen_flags: <defaults>
</compile_context>

<pallas_src>
import jax
import jax.numpy as jnp
from jax import lax
from jax.experimental import pallas as pl
from jax.experimental.pallas import tpu as pltpu


def _round_up(x, m):
    return ((x + m - 1) // m) * m


def sentence_encoder_kernel(ids_ref, table_ref, o_ref):
    """Fused gather + max-over-sequence for a tile of Bt sentences.

    ids_ref:   SMEM (B_pad, S) int32 -- ALL token ids (scalar-prefetched before the grid)
    table_ref: VMEM (Vp, Hp)   f32   -- projected table  emb_table @ W^T + b  (zero padded)
    o_ref:     VMEM (Bt, Hp)   f32   -- per-sentence max over the sequence
    """
    i = pl.program_id(0)
    bt = o_ref.shape[0]
    seq = ids_ref.shape[1]

    rows = []
    for r in range(bt):                                   # static unroll over the sentence tile
        row = i * bt + r                                  # global sentence index (scalar)
        acc0 = table_ref[pl.ds(ids_ref[row, 0], 1), :]    # (1, Hp) dynamic-slice gather

        def body(s, acc, row=row):
            tok = ids_ref[row, s]                         # cheap SMEM scalar read
            return jnp.maximum(acc, table_ref[pl.ds(tok, 1), :])

        rows.append(lax.fori_loop(1, seq, body, acc0, unroll=True))

    # Single dense (Bt, Hp) store into the output block (full-lane, full-sublane).
    o_ref[...] = jnp.concatenate(rows, axis=0)


def sentence_encoder_forward(token_ids, emb_table, w, b, *, bt=8):
    """token_ids: (B, S) int; emb_table: (V, H); w: (H_out, H_in) PyTorch layout; b: (H,)."""
    B, S = token_ids.shape
    V, H = emb_table.shape
    Hp = _round_up(H, 128)        # lane-dense output (full 128-lane stores)
    Vp = _round_up(V, 8)          # sublane-aligned table
    Bp = _round_up(B, bt)         # whole sentence tiles

    # Fold the Linear into the embedding table once: table_proj[v] = emb_table[v] @ W^T + b.
    # DEFAULT matmul precision (gather commutes exactly; reference uses the same precision).
    table_proj = lax.dot_general(
        emb_table.astype(jnp.float32), w.astype(jnp.float32),
        dimension_numbers=(((1,), (1,)), ((), ())),
    ) + b.astype(jnp.float32)[None, :]                                 # (V, H)
    table_pad = jnp.pad(table_proj, ((0, Vp - V), (0, Hp - H)))        # (Vp, Hp)

    ids_pad = jnp.pad(token_ids.astype(jnp.int32), ((0, Bp - B), (0, 0)))   # (Bp, S)

    # Explicit scoped-VMEM budget: double-buffered table + output + headroom, clamped so it
    # stays within v7x's 64 MiB physical VMEM.
    vmem_limit = int(min(max(2 * Vp * Hp * 4 + 2 * bt * Hp * 4 + (1 << 20), 4 << 20), 64 << 20))

    out = pl.pallas_call(
        sentence_encoder_kernel,
        out_shape=jax.ShapeDtypeStruct((Bp, Hp), jnp.float32),
        grid_spec=pltpu.PrefetchScalarGridSpec(
            num_scalar_prefetch=1,                                   # ids -> SMEM
            grid=(Bp // bt,),
            in_specs=[
                # Constant index_map: the projected table stays resident in VMEM across steps.
                pl.BlockSpec((Vp, Hp), lambda i, ids: (0, 0)),
            ],
            out_specs=pl.BlockSpec((bt, Hp), lambda i, ids: (i, 0)),
        ),
        compiler_params=pltpu.CompilerParams(
            dimension_semantics=("parallel",),   # sentence tiles shard across TensorCores
            vmem_limit_bytes=vmem_limit,
        ),
    )(ids_pad, table_pad)

    return out[:B, :H]                                               # strip batch/lane padding


if __name__ == "__main__":
    # config: hidden_size=32, vocab_size=30 (+1 for padding), max_length=8
    hidden_size = 32
    vocab_size = 30 + 1
    max_length = 8
    batch = 2

    key = jax.random.PRNGKey(0)
    k_emb, k_w, k_b, k_x = jax.random.split(key, 4)

    # Deterministic parameter init (shapes match nn.Embedding / nn.Linear).
    emb_table = jax.random.normal(k_emb, (vocab_size, hidden_size), dtype=jnp.float32)
    emb_table = emb_table.at[0].set(0.0)                 # padding_idx=0
    bound = 1.0 / float(hidden_size) ** 0.5
    w = jax.random.uniform(k_w, (hidden_size, hidden_size),
                           minval=-bound, maxval=bound, dtype=jnp.float32)
    b = jax.random.uniform(k_b, (hidden_size,),
                           minval=-bound, maxval=bound, dtype=jnp.float32)

    # Example input token ids (include some padding zeros).
    token_ids = jax.random.randint(k_x, (batch, max_length), 0, vocab_size, dtype=jnp.int32)
    token_ids = token_ids.at[:, -2:].set(0)              # simulate padded tail
    # Note: padded positions still contribute (0 @ W^T + b) = b to the max, exactly like the
    # PyTorch reference (padding_idx only zeroes the embedding row).

    fwd = jax.jit(sentence_encoder_forward)
    out = jax.block_until_ready(fwd(token_ids, emb_table, w, b))

    # Pure-JAX reference in the original (embed -> linear -> max over seq) formulation,
    # at the same (DEFAULT) matmul precision as the kernel-side fold.
    ref = jnp.max(jnp.einsum("bsh,oh->bso", emb_table[token_ids], w) + b, axis=1)

    assert out.shape == (batch, hidden_size)
    assert jnp.allclose(out, ref, atol=1e-5, rtol=1e-5), (out, ref)

    print("KERNEL_OK")
</pallas_src>

<mosaic_0001>
module attributes {stable_mosaic.version = 11 : i64} {
  func.func @sentence_encoder_kernel(%arg0: i32, %arg1: memref<8x8xi32, #tpu.memory_space<smem>>, %arg2: memref<32x128xf32, #tpu.memory_space<vmem>>, %arg3: memref<8x128xf32, #tpu.memory_space<vmem>>) attributes {dimension_semantics = [#tpu.dimension_semantics<parallel>], iteration_bounds = array<i64: 1>, scalar_prefetch = 1 : i64, scratch_operands = 0 : i64, tpu.core_type = #tpu.core_type<tc>, window_params = [{pipeline_mode = #tpu.pipeline_mode<synchronous>, transform_indices = @transform_0, window_bounds = array<i64: 32, 128>}, {transform_indices = @transform_1, window_bounds = array<i64: 8, 128>}]} {
    %c8_i32 = arith.constant 8 : i32
    %0 = arith.muli %arg0, %c8_i32 : i32
    %c0_i32 = arith.constant 0 : i32
    %1 = arith.addi %0, %c0_i32 : i32
    %2 = arith.index_cast %1 : i32 to index
    %c0 = arith.constant 0 : index
    %3 = memref.load %arg1[%2, %c0] : memref<8x8xi32, #tpu.memory_space<smem>>
    %4 = arith.index_cast %3 : i32 to index
    %c0_0 = arith.constant 0 : index
    %5 = vector.load %arg2[%4, %c0_0] : memref<32x128xf32, #tpu.memory_space<vmem>>, vector<1x128xf32>
    %c1_i32 = arith.constant 1 : i32
    %6 = arith.index_cast %1 : i32 to index
    %7 = arith.index_cast %c1_i32 : i32 to index
    %8 = memref.load %arg1[%6, %7] : memref<8x8xi32, #tpu.memory_space<smem>>
    %9 = arith.index_cast %8 : i32 to index
    %c0_1 = arith.constant 0 : index
    %10 = vector.load %arg2[%9, %c0_1] : memref<32x128xf32, #tpu.memory_space<vmem>>, vector<1x128xf32>
    %11 = arith.maximumf %5, %10 : vector<1x128xf32>
    %c2_i32 = arith.constant 2 : i32
    %12 = arith.index_cast %1 : i32 to index
    %13 = arith.index_cast %c2_i32 : i32 to index
    %14 = memref.load %arg1[%12, %13] : memref<8x8xi32, #tpu.memory_space<smem>>
    %15 = arith.index_cast %14 : i32 to index
    %c0_2 = arith.constant 0 : index
    %16 = vector.load %arg2[%15, %c0_2] : memref<32x128xf32, #tpu.memory_space<vmem>>, vector<1x128xf32>
    %17 = arith.maximumf %11, %16 : vector<1x128xf32>
    %c3_i32 = arith.constant 3 : i32
    %18 = arith.index_cast %1 : i32 to index
    %19 = arith.index_cast %c3_i32 : i32 to index
    %20 = memref.load %arg1[%18, %19] : memref<8x8xi32, #tpu.memory_space<smem>>
    %21 = arith.index_cast %20 : i32 to index
    %c0_3 = arith.constant 0 : index
    %22 = vector.load %arg2[%21, %c0_3] : memref<32x128xf32, #tpu.memory_space<vmem>>, vector<1x128xf32>
    %23 = arith.maximumf %17, %22 : vector<1x128xf32>
    %c4_i32 = arith.constant 4 : i32
    %24 = arith.index_cast %1 : i32 to index
    %25 = arith.index_cast %c4_i32 : i32 to index
    %26 = memref.load %arg1[%24, %25] : memref<8x8xi32, #tpu.memory_space<smem>>
    %27 = arith.index_cast %26 : i32 to index
    %c0_4 = arith.constant 0 : index
    %28 = vector.load %arg2[%27, %c0_4] : memref<32x128xf32, #tpu.memory_space<vmem>>, vector<1x128xf32>
    %29 = arith.maximumf %23, %28 : vector<1x128xf32>
    %c5_i32 = arith.constant 5 : i32
    %30 = arith.index_cast %1 : i32 to index
    %31 = arith.index_cast %c5_i32 : i32 to index
    %32 = memref.load %arg1[%30, %31] : memref<8x8xi32, #tpu.memory_space<smem>>
    %33 = arith.index_cast %32 : i32 to index
    %c0_5 = arith.constant 0 : index
    %34 = vector.load %arg2[%33, %c0_5] : memref<32x128xf32, #tpu.memory_space<vmem>>, vector<1x128xf32>
    %35 = arith.maximumf %29, %34 : vector<1x128xf32>
    %c6_i32 = arith.constant 6 : i32
    %36 = arith.index_cast %1 : i32 to index
    %37 = arith.index_cast %c6_i32 : i32 to index
    %38 = memref.load %arg1[%36, %37] : memref<8x8xi32, #tpu.memory_space<smem>>
    %39 = arith.index_cast %38 : i32 to index
    %c0_6 = arith.constant 0 : index
    %40 = vector.load %arg2[%39, %c0_6] : memref<32x128xf32, #tpu.memory_space<vmem>>, vector<1x128xf32>
    %41 = arith.maximumf %35, %40 : vector<1x128xf32>
    %c7_i32 = arith.constant 7 : i32
    %42 = arith.index_cast %1 : i32 to index
    %43 = arith.index_cast %c7_i32 : i32 to index
    %44 = memref.load %arg1[%42, %43] : memref<8x8xi32, #tpu.memory_space<smem>>
    %45 = arith.index_cast %44 : i32 to index
    %c0_7 = arith.constant 0 : index
    %46 = vector.load %arg2[%45, %c0_7] : memref<32x128xf32, #tpu.memory_space<vmem>>, vector<1x128xf32>
    %47 = arith.maximumf %41, %46 : vector<1x128xf32>
    %c7_i32_8 = arith.constant 7 : i32
    %c8_i32_9 = arith.constant 8 : i32
    %48 = arith.muli %arg0, %c8_i32_9 : i32
    %c1_i32_10 = arith.constant 1 : i32
    %49 = arith.addi %48, %c1_i32_10 : i32
    %50 = arith.index_cast %49 : i32 to index
    %c0_11 = arith.constant 0 : index
    %51 = memref.load %arg1[%50, %c0_11] : memref<8x8xi32, #tpu.memory_space<smem>>
    %52 = arith.index_cast %51 : i32 to index
    %c0_12 = arith.constant 0 : index
    %53 = vector.load %arg2[%52, %c0_12] : memref<32x128xf32, #tpu.memory_space<vmem>>, vector<1x128xf32>
    %c1_i32_13 = arith.constant 1 : i32
    %54 = arith.index_cast %49 : i32 to index
    %55 = arith.index_cast %c1_i32_13 : i32 to index
    %56 = memref.load %arg1[%54, %55] : memref<8x8xi32, #tpu.memory_space<smem>>
    %57 = arith.index_cast %56 : i32 to index
    %c0_14 = arith.constant 0 : index
    %58 = vector.load %arg2[%57, %c0_14] : memref<32x128xf32, #tpu.memory_space<vmem>>, vector<1x128xf32>
    %59 = arith.maximumf %53, %58 : vector<1x128xf32>
    %c2_i32_15 = arith.constant 2 : i32
    %60 = arith.index_cast %49 : i32 to index
    %61 = arith.index_cast %c2_i32_15 : i32 to index
    %62 = memref.load %arg1[%60, %61] : memref<8x8xi32, #tpu.memory_space<smem>>
    %63 = arith.index_cast %62 : i32 to index
    %c0_16 = arith.constant 0 : index
    %64 = vector.load %arg2[%63, %c0_16] : memref<32x128xf32, #tpu.memory_space<vmem>>, vector<1x128xf32>
    %65 = arith.maximumf %59, %64 : vector<1x128xf32>
    %c3_i32_17 = arith.constant 3 : i32
    %66 = arith.index_cast %49 : i32 to index
    %67 = arith.index_cast %c3_i32_17 : i32 to index
    %68 = memref.load %arg1[%66, %67] : memref<8x8xi32, #tpu.memory_space<smem>>
    %69 = arith.index_cast %68 : i32 to index
    %c0_18 = arith.constant 0 : index
    %70 = vector.load %arg2[%69, %c0_18] : memref<32x128xf32, #tpu.memory_space<vmem>>, vector<1x128xf32>
    %71 = arith.maximumf %65, %70 : vector<1x128xf32>
    %c4_i32_19 = arith.constant 4 : i32
    %72 = arith.index_cast %49 : i32 to index
    %73 = arith.index_cast %c4_i32_19 : i32 to index
    %74 = memref.load %arg1[%72, %73] : memref<8x8xi32, #tpu.memory_space<smem>>
    %75 = arith.index_cast %74 : i32 to index
    %c0_20 = arith.constant 0 : index
    %76 = vector.load %arg2[%75, %c0_20] : memref<32x128xf32, #tpu.memory_space<vmem>>, vector<1x128xf32>
    %77 = arith.maximumf %71, %76 : vector<1x128xf32>
    %c5_i32_21 = arith.constant 5 : i32
    %78 = arith.index_cast %49 : i32 to index
    %79 = arith.index_cast %c5_i32_21 : i32 to index
    %80 = memref.load %arg1[%78, %79] : memref<8x8xi32, #tpu.memory_space<smem>>
    %81 = arith.index_cast %80 : i32 to index
    %c0_22 = arith.constant 0 : index
    %82 = vector.load %arg2[%81, %c0_22] : memref<32x128xf32, #tpu.memory_space<vmem>>, vector<1x128xf32>
    %83 = arith.maximumf %77, %82 : vector<1x128xf32>
    %c6_i32_23 = arith.constant 6 : i32
    %84 = arith.index_cast %49 : i32 to index
    %85 = arith.index_cast %c6_i32_23 : i32 to index
    %86 = memref.load %arg1[%84, %85] : memref<8x8xi32, #tpu.memory_space<smem>>
    %87 = arith.index_cast %86 : i32 to index
    %c0_24 = arith.constant 0 : index
    %88 = vector.load %arg2[%87, %c0_24] : memref<32x128xf32, #tpu.memory_space<vmem>>, vector<1x128xf32>
    %89 = arith.maximumf %83, %88 : vector<1x128xf32>
    %c7_i32_25 = arith.constant 7 : i32
    %90 = arith.index_cast %49 : i32 to index
    %91 = arith.index_cast %c7_i32_25 : i32 to index
    %92 = memref.load %arg1[%90, %91] : memref<8x8xi32, #tpu.memory_space<smem>>
    %93 = arith.index_cast %92 : i32 to index
    %c0_26 = arith.constant 0 : index
    %94 = vector.load %arg2[%93, %c0_26] : memref<32x128xf32, #tpu.memory_space<vmem>>, vector<1x128xf32>
    %95 = arith.maximumf %89, %94 : vector<1x128xf32>
    %c7_i32_27 = arith.constant 7 : i32
    %c8_i32_28 = arith.constant 8 : i32
    %96 = arith.muli %arg0, %c8_i32_28 : i32
    %c2_i32_29 = arith.constant 2 : i32
    %97 = arith.addi %96, %c2_i32_29 : i32
    %98 = arith.index_cast %97 : i32 to index
    %c0_30 = arith.constant 0 : index
    %99 = memref.load %arg1[%98, %c0_30] : memref<8x8xi32, #tpu.memory_space<smem>>
    %100 = arith.index_cast %99 : i32 to index
    %c0_31 = arith.constant 0 : index
    %101 = vector.load %arg2[%100, %c0_31] : memref<32x128xf32, #tpu.memory_space<vmem>>, vector<1x128xf32>
    %c1_i32_32 = arith.constant 1 : i32
    %102 = arith.index_cast %97 : i32 to index
    %103 = arith.index_cast %c1_i32_32 : i32 to index
    %104 = memref.load %arg1[%102, %103] : memref<8x8xi32, #tpu.memory_space<smem>>
    %105 = arith.index_cast %104 : i32 to index
    %c0_33 = arith.constant 0 : index
    %106 = vector.load %arg2[%105, %c0_33] : memref<32x128xf32, #tpu.memory_space<vmem>>, vector<1x128xf32>
    %107 = arith.maximumf %101, %106 : vector<1x128xf32>
    %c2_i32_34 = arith.constant 2 : i32
    %108 = arith.index_cast %97 : i32 to index
    %109 = arith.index_cast %c2_i32_34 : i32 to index
    %110 = memref.load %arg1[%108, %109] : memref<8x8xi32, #tpu.memory_space<smem>>
    %111 = arith.index_cast %110 : i32 to index
    %c0_35 = arith.constant 0 : index
    %112 = vector.load %arg2[%111, %c0_35] : memref<32x128xf32, #tpu.memory_space<vmem>>, vector<1x128xf32>
    %113 = arith.maximumf %107, %112 : vector<1x128xf32>
    %c3_i32_36 = arith.constant 3 : i32
    %114 = arith.index_cast %97 : i32 to index
    %115 = arith.index_cast %c3_i32_36 : i32 to index
    %116 = memref.load %arg1[%114, %115] : memref<8x8xi32, #tpu.memory_space<smem>>
    %117 = arith.index_cast %116 : i32 to index
    %c0_37 = arith.constant 0 : index
    %118 = vector.load %arg2[%117, %c0_37] : memref<32x128xf32, #tpu.memory_space<vmem>>, vector<1x128xf32>
    %119 = arith.maximumf %113, %118 : vector<1x128xf32>
    %c4_i32_38 = arith.constant 4 : i32
    %120 = arith.index_cast %97 : i32 to index
    %121 = arith.index_cast %c4_i32_38 : i32 to index
    %122 = memref.load %arg1[%120, %121] : memref<8x8xi32, #tpu.memory_space<smem>>
    %123 = arith.index_cast %122 : i32 to index
    %c0_39 = arith.constant 0 : index
    %124 = vector.load %arg2[%123, %c0_39] : memref<32x128xf32, #tpu.memory_space<vmem>>, vector<1x128xf32>
    %125 = arith.maximumf %119, %124 : vector<1x128xf32>
    %c5_i32_40 = arith.constant 5 : i32
    %126 = arith.index_cast %97 : i32 to index
    %127 = arith.index_cast %c5_i32_40 : i32 to index
    %128 = memref.load %arg1[%126, %127] : memref<8x8xi32, #tpu.memory_space<smem>>
    %129 = arith.index_cast %128 : i32 to index
    %c0_41 = arith.constant 0 : index
    %130 = vector.load %arg2[%129, %c0_41] : memref<32x128xf32, #tpu.memory_space<vmem>>, vector<1x128xf32>
    %131 = arith.maximumf %125, %130 : vector<1x128xf32>
    %c6_i32_42 = arith.constant 6 : i32
    %132 = arith.index_cast %97 : i32 to index
    %133 = arith.index_cast %c6_i32_42 : i32 to index
    %134 = memref.load %arg1[%132, %133] : memref<8x8xi32, #tpu.memory_space<smem>>
    %135 = arith.index_cast %134 : i32 to index
    %c0_43 = arith.constant 0 : index
    %136 = vector.load %arg2[%135, %c0_43] : memref<32x128xf32, #tpu.memory_space<vmem>>, vector<1x128xf32>
    %137 = arith.maximumf %131, %136 : vector<1x128xf32>
    %c7_i32_44 = arith.constant 7 : i32
    %138 = arith.index_cast %97 : i32 to index
    %139 = arith.index_cast %c7_i32_44 : i32 to index
    %140 = memref.load %arg1[%138, %139] : memref<8x8xi32, #tpu.memory_space<smem>>
    %141 = arith.index_cast %140 : i32 to index
    %c0_45 = arith.constant 0 : index
    %142 = vector.load %arg2[%141, %c0_45] : memref<32x128xf32, #tpu.memory_space<vmem>>, vector<1x128xf32>
    %143 = arith.maximumf %137, %142 : vector<1x128xf32>
    %c7_i32_46 = arith.constant 7 : i32
    %c8_i32_47 = arith.constant 8 : i32
    %144 = arith.muli %arg0, %c8_i32_47 : i32
    %c3_i32_48 = arith.constant 3 : i32
    %145 = arith.addi %144, %c3_i32_48 : i32
    %146 = arith.index_cast %145 : i32 to index
    %c0_49 = arith.constant 0 : index
    %147 = memref.load %arg1[%146, %c0_49] : memref<8x8xi32, #tpu.memory_space<smem>>
    %148 = arith.index_cast %147 : i32 to index
    %c0_50 = arith.constant 0 : index
    %149 = vector.load %arg2[%148, %c0_50] : memref<32x128xf32, #tpu.memory_space<vmem>>, vector<1x128xf32>
    %c1_i32_51 = arith.constant 1 : i32
    %150 = arith.index_cast %145 : i32 to index
    %151 = arith.index_cast %c1_i32_51 : i32 to index
    %152 = memref.load %arg1[%150, %151] : memref<8x8xi32, #tpu.memory_space<smem>>
    %153 = arith.index_cast %152 : i32 to index
    %c0_52 = arith.constant 0 : index
    %154 = vector.load %arg2[%153, %c0_52] : memref<32x128xf32, #tpu.memory_space<vmem>>, vector<1x128xf32>
    %155 = arith.maximumf %149, %154 : vector<1x128xf32>
    %c2_i32_53 = arith.constant 2 : i32
    %156 = arith.index_cast %145 : i32 to index
    %157 = arith.index_cast %c2_i32_53 : i32 to index
    %158 = memref.load %arg1[%156, %157] : memref<8x8xi32, #tpu.memory_space<smem>>
    %159 = arith.index_cast %158 : i32 to index
    %c0_54 = arith.constant 0 : index
    %160 = vector.load %arg2[%159, %c0_54] : memref<32x128xf32, #tpu.memory_space<vmem>>, vector<1x128xf32>
    %161 = arith.maximumf %155, %160 : vector<1x128xf32>
    %c3_i32_55 = arith.constant 3 : i32
    %162 = arith.index_cast %145 : i32 to index
    %163 = arith.index_cast %c3_i32_55 : i32 to index
    %164 = memref.load %arg1[%162, %163] : memref<8x8xi32, #tpu.memory_space<smem>>
    %165 = arith.index_cast %164 : i32 to index
    %c0_56 = arith.constant 0 : index
    %166 = vector.load %arg2[%165, %c0_56] : memref<32x128xf32, #tpu.memory_space<vmem>>, vector<1x128xf32>
    %167 = arith.maximumf %161, %166 : vector<1x128xf32>
    %c4_i32_57 = arith.constant 4 : i32
    %168 = arith.index_cast %145 : i32 to index
    %169 = arith.index_cast %c4_i32_57 : i32 to index
    %170 = memref.load %arg1[%168, %169] : memref<8x8xi32, #tpu.memory_space<smem>>
    %171 = arith.index_cast %170 : i32 to index
    %c0_58 = arith.constant 0 : index
    %172 = vector.load %arg2[%171, %c0_58] : memref<32x128xf32, #tpu.memory_space<vmem>>, vector<1x128xf32>
    %173 = arith.maximumf %167, %172 : vector<1x128xf32>
    %c5_i32_59 = arith.constant 5 : i32
    %174 = arith.index_cast %145 : i32 to index
    %175 = arith.index_cast %c5_i32_59 : i32 to index
    %176 = memref.load %arg1[%174, %175] : memref<8x8xi32, #tpu.memory_space<smem>>
    %177 = arith.index_cast %176 : i32 to index
    %c0_60 = arith.constant 0 : index
    %178 = vector.load %arg2[%177, %c0_60] : memref<32x128xf32, #tpu.memory_space<vmem>>, vector<1x128xf32>
    %179 = arith.maximumf %173, %178 : vector<1x128xf32>
    %c6_i32_61 = arith.constant 6 : i32
    %180 = arith.index_cast %145 : i32 to index
    %181 = arith.index_cast %c6_i32_61 : i32 to index
    %182 = memref.load %arg1[%180, %181] : memref<8x8xi32, #tpu.memory_space<smem>>
    %183 = arith.index_cast %182 : i32 to index
    %c0_62 = arith.constant 0 : index
    %184 = vector.load %arg2[%183, %c0_62] : memref<32x128xf32, #tpu.memory_space<vmem>>, vector<1x128xf32>
    %185 = arith.maximumf %179, %184 : vector<1x128xf32>
    %c7_i32_63 = arith.constant 7 : i32
    %186 = arith.index_cast %145 : i32 to index
    %187 = arith.index_cast %c7_i32_63 : i32 to index
    %188 = memref.load %arg1[%186, %187] : memref<8x8xi32, #tpu.memory_space<smem>>
    %189 = arith.index_cast %188 : i32 to index
    %c0_64 = arith.constant 0 : index
    %190 = vector.load %arg2[%189, %c0_64] : memref<32x128xf32, #tpu.memory_space<vmem>>, vector<1x128xf32>
    %191 = arith.maximumf %185, %190 : vector<1x128xf32>
    %c7_i32_65 = arith.constant 7 : i32
    %c8_i32_66 = arith.constant 8 : i32
    %192 = arith.muli %arg0, %c8_i32_66 : i32
    %c4_i32_67 = arith.constant 4 : i32
    %193 = arith.addi %192, %c4_i32_67 : i32
    %194 = arith.index_cast %193 : i32 to index
    %c0_68 = arith.constant 0 : index
    %195 = memref.load %arg1[%194, %c0_68] : memref<8x8xi32, #tpu.memory_space<smem>>
    %196 = arith.index_cast %195 : i32 to index
    %c0_69 = arith.constant 0 : index
    %197 = vector.load %arg2[%196, %c0_69] : memref<32x128xf32, #tpu.memory_space<vmem>>, vector<1x128xf32>
    %c1_i32_70 = arith.constant 1 : i32
    %198 = arith.index_cast %193 : i32 to index
    %199 = arith.index_cast %c1_i32_70 : i32 to index
    %200 = memref.load %arg1[%198, %199] : memref<8x8xi32, #tpu.memory_space<smem>>
    %201 = arith.index_cast %200 : i32 to index
    %c0_71 = arith.constant 0 : index
    %202 = vector.load %arg2[%201, %c0_71] : memref<32x128xf32, #tpu.memory_space<vmem>>, vector<1x128xf32>
    %203 = arith.maximumf %197, %202 : vector<1x128xf32>
    %c2_i32_72 = arith.constant 2 : i32
    %204 = arith.index_cast %193 : i32 to index
    %205 = arith.index_cast %c2_i32_72 : i32 to index
    %206 = memref.load %arg1[%204, %205] : memref<8x8xi32, #tpu.memory_space<smem>>
    %207 = arith.index_cast %206 : i32 to index
    %c0_73 = arith.constant 0 : index
    %208 = vector.load %arg2[%207, %c0_73] : memref<32x128xf32, #tpu.memory_space<vmem>>, vector<1x128xf32>
    %209 = arith.maximumf %203, %208 : vector<1x128xf32>
    %c3_i32_74 = arith.constant 3 : i32
    %210 = arith.index_cast %193 : i32 to index
    %211 = arith.index_cast %c3_i32_74 : i32 to index
    %212 = memref.load %arg1[%210, %211] : memref<8x8xi32, #tpu.memory_space<smem>>
    %213 = arith.index_cast %212 : i32 to index
    %c0_75 = arith.constant 0 : index
    %214 = vector.load %arg2[%213, %c0_75] : memref<32x128xf32, #tpu.memory_space<vmem>>, vector<1x128xf32>
    %215 = arith.maximumf %209, %214 : vector<1x128xf32>
    %c4_i32_76 = arith.constant 4 : i32
    %216 = arith.index_cast %193 : i32 to index
    %217 = arith.index_cast %c4_i32_76 : i32 to index
    %218 = memref.load %arg1[%216, %217] : memref<8x8xi32, #tpu.memory_space<smem>>
    %219 = arith.index_cast %218 : i32 to index
    %c0_77 = arith.constant 0 : index
    %220 = vector.load %arg2[%219, %c0_77] : memref<32x128xf32, #tpu.memory_space<vmem>>, vector<1x128xf32>
    %221 = arith.maximumf %215, %220 : vector<1x128xf32>
    %c5_i32_78 = arith.constant 5 : i32
    %222 = arith.index_cast %193 : i32 to index
    %223 = arith.index_cast %c5_i32_78 : i32 to index
    %224 = memref.load %arg1[%222, %223] : memref<8x8xi32, #tpu.memory_space<smem>>
    %225 = arith.index_cast %224 : i32 to index
    %c0_79 = arith.constant 0 : index
    %226 = vector.load %arg2[%225, %c0_79] : memref<32x128xf32, #tpu.memory_space<vmem>>, vector<1x128xf32>
    %227 = arith.maximumf %221, %226 : vector<1x128xf32>
    %c6_i32_80 = arith.constant 6 : i32
    %228 = arith.index_cast %193 : i32 to index
    %229 = arith.index_cast %c6_i32_80 : i32 to index
    %230 = memref.load %arg1[%228, %229] : memref<8x8xi32, #tpu.memory_space<smem>>
    %231 = arith.index_cast %230 : i32 to index
    %c0_81 = arith.constant 0 : index
    %232 = vector.load %arg2[%231, %c0_81] : memref<32x128xf32, #tpu.memory_space<vmem>>, vector<1x128xf32>
    %233 = arith.maximumf %227, %232 : vector<1x128xf32>
    %c7_i32_82 = arith.constant 7 : i32
    %234 = arith.index_cast %193 : i32 to index
    %235 = arith.index_cast %c7_i32_82 : i32 to index
    %236 = memref.load %arg1[%234, %235] : memref<8x8xi32, #tpu.memory_space<smem>>
    %237 = arith.index_cast %236 : i32 to index
    %c0_83 = arith.constant 0 : index
    %238 = vector.load %arg2[%237, %c0_83] : memref<32x128xf32, #tpu.memory_space<vmem>>, vector<1x128xf32>
    %239 = arith.maximumf %233, %238 : vector<1x128xf32>
    %c7_i32_84 = arith.constant 7 : i32
    %c8_i32_85 = arith.constant 8 : i32
    %240 = arith.muli %arg0, %c8_i32_85 : i32
    %c5_i32_86 = arith.constant 5 : i32
    %241 = arith.addi %240, %c5_i32_86 : i32
    %242 = arith.index_cast %241 : i32 to index
    %c0_87 = arith.constant 0 : index
    %243 = memref.load %arg1[%242, %c0_87] : memref<8x8xi32, #tpu.memory_space<smem>>
    %244 = arith.index_cast %243 : i32 to index
    %c0_88 = arith.constant 0 : index
    %245 = vector.load %arg2[%244, %c0_88] : memref<32x128xf32, #tpu.memory_space<vmem>>, vector<1x128xf32>
    %c1_i32_89 = arith.constant 1 : i32
    %246 = arith.index_cast %241 : i32 to index
    %247 = arith.index_cast %c1_i32_89 : i32 to index
    %248 = memref.load %arg1[%246, %247] : memref<8x8xi32, #tpu.memory_space<smem>>
    %249 = arith.index_cast %248 : i32 to index
    %c0_90 = arith.constant 0 : index
    %250 = vector.load %arg2[%249, %c0_90] : memref<32x128xf32, #tpu.memory_space<vmem>>, vector<1x128xf32>
    %251 = arith.maximumf %245, %250 : vector<1x128xf32>
    %c2_i32_91 = arith.constant 2 : i32
    %252 = arith.index_cast %241 : i32 to index
    %253 = arith.index_cast %c2_i32_91 : i32 to index
    %254 = memref.load %arg1[%252, %253] : memref<8x8xi32, #tpu.memory_space<smem>>
    %255 = arith.index_cast %254 : i32 to index
    %c0_92 = arith.constant 0 : index
    %256 = vector.load %arg2[%255, %c0_92] : memref<32x128xf32, #tpu.memory_space<vmem>>, vector<1x128xf32>
    %257 = arith.maximumf %251, %256 : vector<1x128xf32>
    %c3_i32_93 = arith.constant 3 : i32
    %258 = arith.index_cast %241 : i32 to index
    %259 = arith.index_cast %c3_i32_93 : i32 to index
    %260 = memref.load %arg1[%258, %259] : memref<8x8xi32, #tpu.memory_space<smem>>
    %261 = arith.index_cast %260 : i32 to index
    %c0_94 = arith.constant 0 : index
    %262 = vector.load %arg2[%261, %c0_94] : memref<32x128xf32, #tpu.memory_space<vmem>>, vector<1x128xf32>
    %263 = arith.maximumf %257, %262 : vector<1x128xf32>
    %c4_i32_95 = arith.constant 4 : i32
    %264 = arith.index_cast %241 : i32 to index
    %265 = arith.index_cast %c4_i32_95 : i32 to index
    %266 = memref.load %arg1[%264, %265] : memref<8x8xi32, #tpu.memory_space<smem>>
    %267 = arith.index_cast %266 : i32 to index
    %c0_96 = arith.constant 0 : index
    %268 = vector.load %arg2[%267, %c0_96] : memref<32x128xf32, #tpu.memory_space<vmem>>, vector<1x128xf32>
    %269 = arith.maximumf %263, %268 : vector<1x128xf32>
    %c5_i32_97 = arith.constant 5 : i32
    %270 = arith.index_cast %241 : i32 to index
    %271 = arith.index_cast %c5_i32_97 : i32 to index
    %272 = memref.load %arg1[%270, %271] : memref<8x8xi32, #tpu.memory_space<smem>>
    %273 = arith.index_cast %272 : i32 to index
    %c0_98 = arith.constant 0 : index
    %274 = vector.load %arg2[%273, %c0_98] : memref<32x128xf32, #tpu.memory_space<vmem>>, vector<1x128xf32>
    %275 = arith.maximumf %269, %274 : vector<1x128xf32>
    %c6_i32_99 = arith.constant 6 : i32
    %276 = arith.index_cast %241 : i32 to index
    %277 = arith.index_cast %c6_i32_99 : i32 to index
    %278 = memref.load %arg1[%276, %277] : memref<8x8xi32, #tpu.memory_space<smem>>
    %279 = arith.index_cast %278 : i32 to index
    %c0_100 = arith.constant 0 : index
    %280 = vector.load %arg2[%279, %c0_100] : memref<32x128xf32, #tpu.memory_space<vmem>>, vector<1x128xf32>
    %281 = arith.maximumf %275, %280 : vector<1x128xf32>
    %c7_i32_101 = arith.constant 7 : i32
    %282 = arith.index_cast %241 : i32 to index
    %283 = arith.index_cast %c7_i32_101 : i32 to index
    %284 = memref.load %arg1[%282, %283] : memref<8x8xi32, #tpu.memory_space<smem>>
    %285 = arith.index_cast %284 : i32 to index
    %c0_102 = arith.constant 0 : index
    %286 = vector.load %arg2[%285, %c0_102] : memref<32x128xf32, #tpu.memory_space<vmem>>, vector<1x128xf32>
    %287 = arith.maximumf %281, %286 : vector<1x128xf32>
    %c7_i32_103 = arith.constant 7 : i32
    %c8_i32_104 = arith.constant 8 : i32
    %288 = arith.muli %arg0, %c8_i32_104 : i32
    %c6_i32_105 = arith.constant 6 : i32
    %289 = arith.addi %288, %c6_i32_105 : i32
    %290 = arith.index_cast %289 : i32 to index
    %c0_106 = arith.constant 0 : index
    %291 = memref.load %arg1[%290, %c0_106] : memref<8x8xi32, #tpu.memory_space<smem>>
    %292 = arith.index_cast %291 : i32 to index
    %c0_107 = arith.constant 0 : index
    %293 = vector.load %arg2[%292, %c0_107] : memref<32x128xf32, #tpu.memory_space<vmem>>, vector<1x128xf32>
    %c1_i32_108 = arith.constant 1 : i32
    %294 = arith.index_cast %289 : i32 to index
    %295 = arith.index_cast %c1_i32_108 : i32 to index
    %296 = memref.load %arg1[%294, %295] : memref<8x8xi32, #tpu.memory_space<smem>>
    %297 = arith.index_cast %296 : i32 to index
    %c0_109 = arith.constant 0 : index
    %298 = vector.load %arg2[%297, %c0_109] : memref<32x128xf32, #tpu.memory_space<vmem>>, vector<1x128xf32>
    %299 = arith.maximumf %293, %298 : vector<1x128xf32>
    %c2_i32_110 = arith.constant 2 : i32
    %300 = arith.index_cast %289 : i32 to index
    %301 = arith.index_cast %c2_i32_110 : i32 to index
    %302 = memref.load %arg1[%300, %301] : memref<8x8xi32, #tpu.memory_space<smem>>
    %303 = arith.index_cast %302 : i32 to index
    %c0_111 = arith.constant 0 : index
    %304 = vector.load %arg2[%303, %c0_111] : memref<32x128xf32, #tpu.memory_space<vmem>>, vector<1x128xf32>
    %305 = arith.maximumf %299, %304 : vector<1x128xf32>
    %c3_i32_112 = arith.constant 3 : i32
    %306 = arith.index_cast %289 : i32 to index
    %307 = arith.index_cast %c3_i32_112 : i32 to index
    %308 = memref.load %arg1[%306, %307] : memref<8x8xi32, #tpu.memory_space<smem>>
    %309 = arith.index_cast %308 : i32 to index
    %c0_113 = arith.constant 0 : index
    %310 = vector.load %arg2[%309, %c0_113] : memref<32x128xf32, #tpu.memory_space<vmem>>, vector<1x128xf32>
    %311 = arith.maximumf %305, %310 : vector<1x128xf32>
    %c4_i32_114 = arith.constant 4 : i32
    %312 = arith.index_cast %289 : i32 to index
    %313 = arith.index_cast %c4_i32_114 : i32 to index
    %314 = memref.load %arg1[%312, %313] : memref<8x8xi32, #tpu.memory_space<smem>>
    %315 = arith.index_cast %314 : i32 to index
    %c0_115 = arith.constant 0 : index
    %316 = vector.load %arg2[%315, %c0_115] : memref<32x128xf32, #tpu.memory_space<vmem>>, vector<1x128xf32>
    %317 = arith.maximumf %311, %316 : vector<1x128xf32>
    %c5_i32_116 = arith.constant 5 : i32
    %318 = arith.index_cast %289 : i32 to index
    %319 = arith.index_cast %c5_i32_116 : i32 to index
    %320 = memref.load %arg1[%318, %319] : memref<8x8xi32, #tpu.memory_space<smem>>
    %321 = arith.index_cast %320 : i32 to index
    %c0_117 = arith.constant 0 : index
    %322 = vector.load %arg2[%321, %c0_117] : memref<32x128xf32, #tpu.memory_space<vmem>>, vector<1x128xf32>
    %323 = arith.maximumf %317, %322 : vector<1x128xf32>
    %c6_i32_118 = arith.constant 6 : i32
    %324 = arith.index_cast %289 : i32 to index
    %325 = arith.index_cast %c6_i32_118 : i32 to index
    %326 = memref.load %arg1[%324, %325] : memref<8x8xi32, #tpu.memory_space<smem>>
    %327 = arith.index_cast %326 : i32 to index
    %c0_119 = arith.constant 0 : index
    %328 = vector.load %arg2[%327, %c0_119] : memref<32x128xf32, #tpu.memory_space<vmem>>, vector<1x128xf32>
    %329 = arith.maximumf %323, %328 : vector<1x128xf32>
    %c7_i32_120 = arith.constant 7 : i32
    %330 = arith.index_cast %289 : i32 to index
    %331 = arith.index_cast %c7_i32_120 : i32 to index
    %332 = memref.load %arg1[%330, %331] : memref<8x8xi32, #tpu.memory_space<smem>>
    %333 = arith.index_cast %332 : i32 to index
    %c0_121 = arith.constant 0 : index
    %334 = vector.load %arg2[%333, %c0_121] : memref<32x128xf32, #tpu.memory_space<vmem>>, vector<1x128xf32>
    %335 = arith.maximumf %329, %334 : vector<1x128xf32>
    %c7_i32_122 = arith.constant 7 : i32
    %c8_i32_123 = arith.constant 8 : i32
    %336 = arith.muli %arg0, %c8_i32_123 : i32
    %c7_i32_124 = arith.constant 7 : i32
    %337 = arith.addi %336, %c7_i32_124 : i32
    %338 = arith.index_cast %337 : i32 to index
    %c0_125 = arith.constant 0 : index
    %339 = memref.load %arg1[%338, %c0_125] : memref<8x8xi32, #tpu.memory_space<smem>>
    %340 = arith.index_cast %339 : i32 to index
    %c0_126 = arith.constant 0 : index
    %341 = vector.load %arg2[%340, %c0_126] : memref<32x128xf32, #tpu.memory_space<vmem>>, vector<1x128xf32>
    %c1_i32_127 = arith.constant 1 : i32
    %342 = arith.index_cast %337 : i32 to index
    %343 = arith.index_cast %c1_i32_127 : i32 to index
    %344 = memref.load %arg1[%342, %343] : memref<8x8xi32, #tpu.memory_space<smem>>
    %345 = arith.index_cast %344 : i32 to index
    %c0_128 = arith.constant 0 : index
    %346 = vector.load %arg2[%345, %c0_128] : memref<32x128xf32, #tpu.memory_space<vmem>>, vector<1x128xf32>
    %347 = arith.maximumf %341, %346 : vector<1x128xf32>
    %c2_i32_129 = arith.constant 2 : i32
    %348 = arith.index_cast %337 : i32 to index
    %349 = arith.index_cast %c2_i32_129 : i32 to index
    %350 = memref.load %arg1[%348, %349] : memref<8x8xi32, #tpu.memory_space<smem>>
    %351 = arith.index_cast %350 : i32 to index
    %c0_130 = arith.constant 0 : index
    %352 = vector.load %arg2[%351, %c0_130] : memref<32x128xf32, #tpu.memory_space<vmem>>, vector<1x128xf32>
    %353 = arith.maximumf %347, %352 : vector<1x128xf32>
    %c3_i32_131 = arith.constant 3 : i32
    %354 = arith.index_cast %337 : i32 to index
    %355 = arith.index_cast %c3_i32_131 : i32 to index
    %356 = memref.load %arg1[%354, %355] : memref<8x8xi32, #tpu.memory_space<smem>>
    %357 = arith.index_cast %356 : i32 to index
    %c0_132 = arith.constant 0 : index
    %358 = vector.load %arg2[%357, %c0_132] : memref<32x128xf32, #tpu.memory_space<vmem>>, vector<1x128xf32>
    %359 = arith.maximumf %353, %358 : vector<1x128xf32>
    %c4_i32_133 = arith.constant 4 : i32
    %360 = arith.index_cast %337 : i32 to index
    %361 = arith.index_cast %c4_i32_133 : i32 to index
    %362 = memref.load %arg1[%360, %361] : memref<8x8xi32, #tpu.memory_space<smem>>
    %363 = arith.index_cast %362 : i32 to index
    %c0_134 = arith.constant 0 : index
    %364 = vector.load %arg2[%363, %c0_134] : memref<32x128xf32, #tpu.memory_space<vmem>>, vector<1x128xf32>
    %365 = arith.maximumf %359, %364 : vector<1x128xf32>
    %c5_i32_135 = arith.constant 5 : i32
    %366 = arith.index_cast %337 : i32 to index
    %367 = arith.index_cast %c5_i32_135 : i32 to index
    %368 = memref.load %arg1[%366, %367] : memref<8x8xi32, #tpu.memory_space<smem>>
    %369 = arith.index_cast %368 : i32 to index
    %c0_136 = arith.constant 0 : index
    %370 = vector.load %arg2[%369, %c0_136] : memref<32x128xf32, #tpu.memory_space<vmem>>, vector<1x128xf32>
    %371 = arith.maximumf %365, %370 : vector<1x128xf32>
    %c6_i32_137 = arith.constant 6 : i32
    %372 = arith.index_cast %337 : i32 to index
    %373 = arith.index_cast %c6_i32_137 : i32 to index
    %374 = memref.load %arg1[%372, %373] : memref<8x8xi32, #tpu.memory_space<smem>>
    %375 = arith.index_cast %374 : i32 to index
    %c0_138 = arith.constant 0 : index
    %376 = vector.load %arg2[%375, %c0_138] : memref<32x128xf32, #tpu.memory_space<vmem>>, vector<1x128xf32>
    %377 = arith.maximumf %371, %376 : vector<1x128xf32>
    %c7_i32_139 = arith.constant 7 : i32
    %378 = arith.index_cast %337 : i32 to index
    %379 = arith.index_cast %c7_i32_139 : i32 to index
    %380 = memref.load %arg1[%378, %379] : memref<8x8xi32, #tpu.memory_space<smem>>
    %381 = arith.index_cast %380 : i32 to index
    %c0_140 = arith.constant 0 : index
    %382 = vector.load %arg2[%381, %c0_140] : memref<32x128xf32, #tpu.memory_space<vmem>>, vector<1x128xf32>
    %383 = arith.maximumf %377, %382 : vector<1x128xf32>
    %c7_i32_141 = arith.constant 7 : i32
    %384 = tpu.concatenate %47, %95, %143, %191, %239, %287, %335, %383 in 0 : vector<1x128xf32>, vector<1x128xf32>, vector<1x128xf32>, vector<1x128xf32>, vector<1x128xf32>, vector<1x128xf32>, vector<1x128xf32>, vector<1x128xf32> -> vector<8x128xf32>
    %c0_142 = arith.constant 0 : index
    %c0_143 = arith.constant 0 : index
    %385 = vector.load %arg3[%c0_142, %c0_143] : memref<8x128xf32, #tpu.memory_space<vmem>>, vector<8x128xf32>
    tpu.vector_store %arg3[%c0_142, %c0_143], %384 {strides = array<i32>} : memref<8x128xf32, #tpu.memory_space<vmem>>, vector<8x128xf32>,
    return
  }
  func.func @transform_0(%arg0: i32, %arg1: memref<8x8xi32, #tpu.memory_space<smem>>) -> (i32, i32) {
    %c0_i32 = arith.constant 0 : i32
    %c0_i32_0 = arith.constant 0 : i32
    %c0_i32_1 = arith.constant 0 : i32
    return %c0_i32, %c0_i32_0 : i32, i32
  }
  func.func @transform_1(%arg0: i32, %arg1: memref<8x8xi32, #tpu.memory_space<smem>>) -> (i32, i32) {
    %c0_i32 = arith.constant 0 : i32
    %c0_i32_0 = arith.constant 0 : i32
    return %arg0, %c0_i32 : i32, i32
  }
}

</mosaic_0001>

<bundles_post_ra>
// kernel: sentence_encoder_forward.1
= control target key start
LH: loop header
LB: loop body
LE: loop exit
PB: predicated region body
PF: predicated region fallthrough
CT: control target
= control target key end

     0   :  { %s519_s12 = smov [#allocation3]   ;;  %s1065_s0 = inlined_call_operand.vmem [shape: s32[8,8], index: 0, kind: input, shape index: {}]   ;;  %s1066_s1 = inlined_call_operand.vmem [shape: f32[32,128], index: 1, kind: input, shape index: {}]   ;;  %s1067_s2 = inlined_call_operand.vmem [shape: f32[8,128], index: 2, kind: output, shape index: {}]  }
   0x1   :  { %1080 = sst [smem:[#allocation17_spill]] %s1067_s2  ;;  %s8_s11 = sshll.u32 %s1065_s0, 4  ;;  %s9_s11 = int_to_ptr.vmem [resolvable:$true] %s8_s11 }
   0x2   :  { %11 = dma.vmem_to_smem %s9_s11, 128, %s519_s12, [#allocation2] }
   0x3   :  { %517 = dma.done.wait [#allocation2], 128 }
   0x4   :  { %518 = vsyncadd [#allocation2], 4294967168 }
   0x5   :  { %14 = sfence }
   0x6   :  { %s538_s13 = sld [smem:[#allocation3]]  ;;  %vm358_vm0 = vcmask 1040384   ;;  %vm360_vm1 = vcmask 1041408   ;;  %vm362_vm2 = vcmask 1042432   ;;  %vm364_vm3 = vcmask 1043456  }
   0x7   :  { %s540_s14 = sld [smem:[#allocation3 + $0x1]]  ;;  %vm366_vm4 = vcmask 1044480   ;;  %vm368_vm5 = vcmask 1045504   ;;  %vm370_vm6 = vcmask 1046528  }
   0x8   :  { %s542_s15 = sld [smem:[#allocation3 + $0x2]] }
   0x9   :  { %s544_s16 = sld [smem:[#allocation3 + $0x3]] }
   0xa   :  { %s546_s17 = sld [smem:[#allocation3 + $0x4]] }
   0xb   :  { %s548_s0 = sld [smem:[#allocation3 + $0x5]] }
   0xc   :  { %s550_s18 = sld [smem:[#allocation3 + $0x6]] }
   0xd   :  { %s556_s22 = sld [smem:[#allocation3 + $0x7]] }
   0xe   :  { %s562_s26 = sld [smem:[#allocation3 + $0x80]] }
   0xf   :  { %s568_s30 = sld [smem:[#allocation3 + $0x81]] }
  0x10   :  { %1081 = sst [smem:[#allocation5_spill]] %s546_s17 }
  0x11   :  { %1082 = sst [smem:[#allocation6_spill]] %s548_s0 }
  0x12   :  { %1083 = sst [smem:[#allocation7_spill]] %s550_s18 }
  0x13   :  { %1084 = sst [smem:[#allocation8_spill]] %s556_s22  ;;  %s1092_s22 = scalar_lea.vmem %s1066_s1, %s538_s13 }
  0x14   :  { %s574_s6 = sld [smem:[#allocation3 + $0x82]]  ;;  %s60_s12 = scalar_lea.vmem %s1066_s1, %s562_s26  ;;  %v21_v2 = vld [vmem:[%s1092_s22] sm:$0x1] }
  0x15   :  { %s580_s10 = sld [smem:[#allocation3 + $0x83]]  ;;  %s64_s24 = scalar_lea.vmem %s1066_s1, %s568_s30  ;;  %v61_v0 = vld [vmem:[%s60_s12] sm:$0x1] }
  0x16   :  { %s586_s20 = sld [smem:[#allocation3 + $0x84]]  ;;  %v65_v1 = vld [vmem:[%s64_s24] sm:$0x1] }
  0x17   :  { %s592_s28 = sld [smem:[#allocation3 + $0x85]]  ;;  %v66_v4 = vmax.f32 %v61_v0, %v65_v1 }
  0x18   :  { %s598_s8 = sld [smem:[#allocation3 + $0x86]] }
  0x19   :  { %s604_s19 = sld [smem:[#allocation3 + $0x87]] }
  0x1a   :  { %s610_s27 = sld [smem:[#allocation3 + $0x100]]  ;;  %s1095_s17 = scalar_lea.vmem %s1066_s1, %s574_s6 }
  0x1b   :  { %s616_s7 = sld [smem:[#allocation3 + $0x101]]  ;;  %v70_v7 = vld [vmem:[%s1095_s17] sm:$0x1]  ;;  %s1096_s17 = scalar_lea.vmem %s1066_s1, %s542_s15 }
  0x1c   :  { %1085 = sst [smem:[#allocation9_spill]] %s586_s20  ;;  %v30_v12 = vld [vmem:[%s1096_s17] sm:$0x1]  ;;  %v71_v13 = vmax.f32 %v66_v4, %v70_v7 }
  0x1d   :  { %1086 = sst [smem:[#allocation10_spill]] %s592_s28 }
  0x1e   :  { %1087 = sst [smem:[#allocation11_spill]] %s598_s8 }
  0x1f   :  { %1088 = sst [smem:[#allocation12_spill]] %s604_s19 }
  0x20   :  { %s622_s11 = sld [smem:[#allocation3 + $0x102]]  ;;  %s100_s29 = scalar_lea.vmem %s1066_s1, %s610_s27 }
  0x21   :  { %s628_s23 = sld [smem:[#allocation3 + $0x103]]  ;;  %s104_s9 = scalar_lea.vmem %s1066_s1, %s616_s7  ;;  %v101_v5 = vld [vmem:[%s100_s29] sm:$0x1] }
  0x22   :  { %s634_s4 = sld [smem:[#allocation3 + $0x104]]  ;;  %v105_v6 = vld [vmem:[%s104_s9] sm:$0x1]  ;;  %s1099_s27 = scalar_lea.vmem %s1066_s1, %s580_s10 }
  0x23   :  { %s640_s26 = sld [smem:[#allocation3 + $0x105]]  ;;  %v106_v9 = vmax.f32 %v101_v5, %v105_v6  ;;  %v75_v15 = vld [vmem:[%s1099_s27] sm:$0x1]  ;;  %s1101_s27 = scalar_lea.vmem %s1066_s1, %s544_s16 }
  0x24   :  { %s646_s30 = sld [smem:[#allocation3 + $0x106]]  ;;  %v35_v18 = vld [vmem:[%s1101_s27] sm:$0x1]  ;;  %v76_v21 = vmax.f32 %v71_v13, %v75_v15 }
  0x25   :  { %s652_s3 = sld [smem:[#allocation3 + $0x107]] }
  0x26   :  { %s658_s8 = sld [smem:[#allocation3 + $0x180]]  ;;  %s1097_s20 = scalar_lea.vmem %s1066_s1, %s622_s11 }
  0x27   :  { %1089 = sst [smem:[#allocation13_spill]] %s628_s23  ;;  %v110_v14 = vld [vmem:[%s1097_s20] sm:$0x1] }
  0x28   :  { %1090 = sst [smem:[#allocation14_spill]] %s634_s4  ;;  %s1093_s4 = scalar_lea.vmem %s1066_s1, %s540_s14  ;;  %v111_v19 = vmax.f32 %v106_v9, %v110_v14 }
  0x29   :  { %1091 = sst [smem:[#allocation15_spill]] %s640_s26  ;;  %v25_v3 = vld [vmem:[%s1093_s4] sm:$0x1] }
  0x2a   :  { %s465_s19 = sld [smem:[#allocation3 + $0x181]]  ;;  %v26_v8 = vmax.f32 %v21_v2, %v25_v3 }
  0x2b   :  { %s668_s2 = sld [smem:[#allocation3 + $0x182]] }
  0x2c   :  { %s674_s25 = sld [smem:[#allocation3 + $0x183]]  ;;  %s140_s21 = scalar_lea.vmem %s1066_s1, %s658_s8  ;;  %v31_v17 = vmax.f32 %v26_v8, %v30_v12 }
  0x2d   :  { %s680_s5 = sld [smem:[#allocation3 + $0x184]]  ;;  %v141_v10 = vld [vmem:[%s140_s21] sm:$0x1] }
  0x2e   :  { %s686_s23 = sld [smem:[#allocation3 + $0x185]]  ;;  %v36_v29 = vmax.f32 %v31_v17, %v35_v18 }
  0x2f   :  { %s702_s26 = sld [smem:[#allocation3 + $0x186]] }
  0x30   :  { %s144_s13 = scalar_lea.vmem %s1066_s1, %s465_s19  ;;  %s707_s22 = sld [smem:[#allocation3 + $0x187]] }
  0x31   :  { %s472_s9 = sld [smem:[#allocation3 + $0x200]]  ;;  %s149_s7 = scalar_lea.vmem %s1066_s1, %s668_s2  ;;  %v145_v11 = vld [vmem:[%s144_s13] sm:$0x1] }
  0x32   :  { %s722_s19 = sld [smem:[#allocation3 + $0x201]]  ;;  %s154_s28 = scalar_lea.vmem %s1066_s1, %s674_s25  ;;  %v146_v16 = vmax.f32 %v141_v10, %v145_v11  ;;  %v150_v20 = vld [vmem:[%s149_s7] sm:$0x1] }
  0x33   :  { %s728_s0 = sld [smem:[#allocation3 + $0x202]]  ;;  %v155_v31 = vld [vmem:[%s154_s28] sm:$0x1] }
  0x34   :  { %s1098_s13 = sld [smem:[#allocation13_spill]]  ;;  %v151_v26 = vmax.f32 %v146_v16, %v150_v20 }
  0x35   :  { %s744_s6 = sld [smem:[#allocation3 + $0x203]] }
  0x36   :  { %1094 = sst [smem:[#allocation16_spill]] %s707_s22  ;;  %v156_v37 = vmax.f32 %v151_v26, %v155_v31 }
  0x37   :  { %s1100_s17 = sld [smem:[#allocation9_spill]]  ;;  %s180_s15 = scalar_lea.vmem %s1066_s1, %s472_s9 }
  0x38   :  { %s755_s11 = sld [smem:[#allocation3 + $0x204]]  ;;  %v181_v23 = vld [vmem:[%s180_s15] sm:$0x1]  ;;  %s184_s10 = scalar_lea.vmem %s1066_s1, %s722_s19 }
  0x39   :  { %s761_s21 = sld [smem:[#allocation3 + $0x205]]  ;;  %v185_v25 = vld [vmem:[%s184_s10] sm:$0x1] }
  0x3a   :  { %s771_s14 = sld [smem:[#allocation3 + $0x206]]  ;;  %s1102_s20 = scalar_lea.vmem %s1066_s1, %s1098_s13  ;;  %v186_v27 = vmax.f32 %v181_v23, %v185_v25 }
  0x3b   :  { %v115_v22 = vld [vmem:[%s1102_s20] sm:$0x1]  ;;  %s1103_s7 = sld [smem:[#allocation5_spill]]  ;;  %s189_s20 = scalar_lea.vmem %s1066_s1, %s728_s0 }
  0x3c   :  { %s782_s27 = sld [smem:[#allocation3 + $0x207]]  ;;  %v190_v28 = vld [vmem:[%s189_s20] sm:$0x1]  ;;  %v116_v30 = vmax.f32 %v111_v19, %v115_v22  ;;  %s1119_s0 = scalar_lea.vmem %s1066_s1, %s686_s23 }
  0x3d   :  { %s1104_s18 = scalar_lea.vmem %s1066_s1, %s1100_s17  ;;  %s1105_s4 = sld [smem:[#allocation14_spill]]  ;;  %v191_v36 = vmax.f32 %v186_v27, %v190_v28  ;;  %v165_v55 = vld [vmem:[%s1119_s0] sm:$0x1] }
  0x3e   :  { %v80_v24 = vld [vmem:[%s1104_s18] sm:$0x1]  ;;  %s793_s15 = sld [smem:[#allocation3 + $0x280]]  ;;  %s194_s18 = scalar_lea.vmem %s1066_s1, %s744_s6 }
  0x3f   :  { %s1106_s8 = sld [smem:[#allocation10_spill]]  ;;  %v81_v33 = vmax.f32 %v76_v21, %v80_v24  ;;  %s199_s6 = scalar_lea.vmem %s1066_s1, %s755_s11  ;;  %v195_v38 = vld [vmem:[%s194_s18] sm:$0x1] }
  0x40   :  { %s799_s17 = sld [smem:[#allocation3 + $0x281]]  ;;  %v196_v47 = vmax.f32 %v191_v36, %v195_v38  ;;  %v200_v50 = vld [vmem:[%s199_s6] sm:$0x1]  ;;  %s1121_s23 = scalar_lea.vmem %s1066_s1, %s646_s30 }
  0x41   :  { %s1107_s2 = sld [smem:[#allocation6_spill]]  ;;  %s1108_s20 = scalar_lea.vmem %s1066_s1, %s1103_s7  ;;  %v130_v59 = vld [vmem:[%s1121_s23] sm:$0x1] }
  0x42   :  { %s810_s13 = sld [smem:[#allocation3 + $0x282]]  ;;  %v40_v32 = vld [vmem:[%s1108_s20] sm:$0x1]  ;;  %s1114_s20 = scalar_lea.vmem %s1066_s1, %s680_s5  ;;  %v201_v62 = vmax.f32 %v196_v47, %v200_v50 }
  0x43   :  { %s1109_s10 = scalar_lea.vmem %s1066_s1, %s1105_s4  ;;  %s826_s29 = sld [smem:[#allocation3 + $0x283]]  ;;  %v41_v39 = vmax.f32 %v36_v29, %v40_v32  ;;  %v160_v42 = vld [vmem:[%s1114_s20] sm:$0x1] }
  0x44   :  { %v120_v34 = vld [vmem:[%s1109_s10] sm:$0x1]  ;;  %s1111_s7 = sld [smem:[#allocation15_spill]]  ;;  %s220_s11 = scalar_lea.vmem %s1066_s1, %s793_s15  ;;  %v161_v49 = vmax.f32 %v156_v37, %v160_v42 }
  0x45   :  { %s1110_s19 = scalar_lea.vmem %s1066_s1, %s1106_s8  ;;  %s837_s4 = sld [smem:[#allocation3 + $0x284]]  ;;  %v121_v41 = vmax.f32 %v116_v30, %v120_v34  ;;  %v221_v45 = vld [vmem:[%s220_s11] sm:$0x1] }
  0x46   :  { %v85_v35 = vld [vmem:[%s1110_s19] sm:$0x1]  ;;  %s1112_s12 = sld [smem:[#allocation11_spill]]  ;;  %s224_s5 = scalar_lea.vmem %s1066_s1, %s799_s17  ;;  %v166_v0 = vmax.f32 %v161_v49, %v165_v55 }
  0x47   :  { %s843_s28 = sld [smem:[#allocation3 + $0x285]]  ;;  %s1113_s9 = scalar_lea.vmem %s1066_s1, %s1107_s2  ;;  %v86_v43 = vmax.f32 %v81_v33, %v85_v35  ;;  %v225_v48 = vld [vmem:[%s224_s5] sm:$0x1] }
  0x48   :  { %v45_v40 = vld [vmem:[%s1113_s9] sm:$0x1]  ;;  %s859_s10 = sld [smem:[#allocation3 + $0x286]]  ;;  %s229_s25 = scalar_lea.vmem %s1066_s1, %s810_s13  ;;  %v226_v51 = vmax.f32 %v221_v45, %v225_v48 }
  0x49   :  { %s870_s9 = sld [smem:[#allocation3 + $0x287]]  ;;  %v230_v52 = vld [vmem:[%s229_s25] sm:$0x1]  ;;  %s234_s11 = scalar_lea.vmem %s1066_s1, %s826_s29  ;;  %v46_v53 = vmax.f32 %v41_v39, %v45_v40 }
  0x4a   :  { %s1115_s8 = scalar_lea.vmem %s1066_s1, %s1111_s7  ;;  %s1117_s16 = sld [smem:[#allocation7_spill]]  ;;  %v235_v56 = vld [vmem:[%s234_s11] sm:$0x1]  ;;  %v231_v60 = vmax.f32 %v226_v51, %v230_v52 }
  0x4b   :  { %v125_v44 = vld [vmem:[%s1115_s8] sm:$0x1]  ;;  %s881_s20 = sld [smem:[#allocation3 + $0x300]]  ;;  %s239_s19 = scalar_lea.vmem %s1066_s1, %s837_s4 }
  0x4c   :  { %s1116_s15 = scalar_lea.vmem %s1066_s1, %s1112_s12  ;;  %s1118_s17 = sld [smem:[#allocation12_spill]]  ;;  %v126_v54 = vmax.f32 %v121_v41, %v125_v44  ;;  %v240_v63 = vld [vmem:[%s239_s19] sm:$0x1]  ;;  %v236_v2 = vmax.f32 %v231_v60, %v235_v56 }
  0x4d   :  { %v90_v46 = vld [vmem:[%s1116_s15] sm:$0x1]  ;;  %s887_s8 = sld [smem:[#allocation3 + $0x301]]  ;;  %s214_s2 = scalar_lea.vmem %s1066_s1, %s782_s27 }
  0x4e   :  { %s898_s24 = sld [smem:[#allocation3 + $0x302]]  ;;  %v91_v58 = vmax.f32 %v86_v43, %v90_v46  ;;  %s244_s5 = scalar_lea.vmem %s1066_s1, %s843_s28  ;;  %v131_v5 = vmax.f32 %v126_v54, %v130_v59  ;;  %v241_v9 = vmax.f32 %v236_v2, %v240_v63  ;;  %v215_v29 = vld [vmem:[%s214_s2] sm:$0x1] }
  0x4f   :  { %s1122_s18 = sld [smem:[#allocation8_spill]]  ;;  %s1124_s7 = scalar_lea.vmem %s1066_s1, %s761_s21  ;;  %v245_v12 = vld [vmem:[%s244_s5] sm:$0x1] }
  0x50   :  { %s1120_s22 = scalar_lea.vmem %s1066_s1, %s1117_s16  ;;  %s914_s4 = sld [smem:[#allocation3 + $0x303]]  ;;  %v205_v1 = vld [vmem:[%s1124_s7] sm:$0x1]  ;;  %v246_v22 = vmax.f32 %v241_v9, %v245_v12 }
  0x51   :  { %v50_v57 = vld [vmem:[%s1120_s22] sm:$0x1]  ;;  %s925_s29 = sld [smem:[#allocation3 + $0x304]]  ;;  %s249_s23 = scalar_lea.vmem %s1066_s1, %s859_s10  ;;  %v206_v11 = vmax.f32 %v201_v62, %v205_v1 }
  0x52   :  { %s1123_s16 = scalar_lea.vmem %s1066_s1, %s1118_s17  ;;  %s936_s12 = sld [smem:[#allocation3 + $0x305]]  ;;  %v51_v3 = vmax.f32 %v46_v53, %v50_v57  ;;  %v250_v26 = vld [vmem:[%s249_s23] sm:$0x1] }
  0x53   :  { %v95_v61 = vld [vmem:[%s1123_s16] sm:$0x1]  ;;  %s1126_s21 = scalar_lea.vmem %s1066_s1, %s702_s26  ;;  %s260_s6 = scalar_lea.vmem %s1066_s1, %s881_s20  ;;  %v251_v33 = vmax.f32 %v246_v22, %v250_v26 }
  0x54   :  { %v170_v6 = vld [vmem:[%s1126_s21] sm:$0x1]  ;;  %s952_s15 = sld [smem:[#allocation3 + $0x306]]  ;;  %v96_v7 = vmax.f32 %v91_v58, %v95_v61  ;;  %s264_s19 = scalar_lea.vmem %s1066_s1, %s887_s8 }
  0x55   :  { %s1125_s11 = scalar_lea.vmem %s1066_s1, %s1122_s18  ;;  %s1127_s18 = scalar_lea.vmem %s1066_s1, %s652_s3  ;;  %v261_v10 = vld [vmem:[%s260_s6] sm:$0x1]  ;;  %v171_v14 = vmax.f32 %v166_v0, %v170_v6 }
  0x56   :  { %v55_v4 = vld [vmem:[%s1125_s11] sm:$0x1]  ;;  %s1128_s26 = sld [smem:[#allocation16_spill]]  ;;  %s269_s13 = scalar_lea.vmem %s1066_s1, %s898_s24  ;;  %v338_v24 = vrot.slane %v96_v7, 7 }
  0x57   :  { %v135_v8 = vld [vmem:[%s1127_s18] sm:$0x1]  ;;  %s963_s28 = sld [smem:[#allocation3 + $0x307]]  ;;  %s1129_s16 = scalar_lea.vmem %s1066_s1, %s771_s14  ;;  %v56_v18 = vmax.f32 %v51_v3, %v55_v4 }
  0x58   :  { %v265_v13 = vld [vmem:[%s264_s19] sm:$0x1]  ;;  %s969_s3 = sld [smem:[#allocation3 + $0x380]]  ;;  %s274_s5 = scalar_lea.vmem %s1066_s1, %s914_s4  ;;  %v136_v19 = vmax.f32 %v131_v5, %v135_v8 }
  0x59   :  { %v210_v15 = vld [vmem:[%s1129_s16] sm:$0x1]  ;;  %v266_v16 = vmax.f32 %v261_v10, %v265_v13  ;;  %s980_s6 = sld [smem:[#allocation3 + $0x381]]  ;;  %s279_s25 = scalar_lea.vmem %s1066_s1, %s925_s29  ;;  %v359_v36 = vsel %vm358_vm0, %v56_v18, %v338_v24 }
  0x5a   :  { %v270_v17 = vld [vmem:[%s269_s13] sm:$0x1]  ;;  %s991_s17 = sld [smem:[#allocation3 + $0x382]]  ;;  %s284_s20 = scalar_lea.vmem %s1066_s1, %s936_s12  ;;  %v211_v25 = vmax.f32 %v206_v11, %v210_v15  ;;  %v341_v32 = vrot.slane %v136_v19, 6 }
  0x5b   :  { %v275_v21 = vld [vmem:[%s274_s5] sm:$0x1]  ;;  %v271_v23 = vmax.f32 %v266_v16, %v270_v17  ;;  %s997_s11 = sld [smem:[#allocation3 + $0x383]]  ;;  %s254_s21 = scalar_lea.vmem %s1066_s1, %s870_s9 }
  0x5c   :  { %s1130_s7 = scalar_lea.vmem %s1066_s1, %s1128_s26  ;;  %v280_v27 = vld [vmem:[%s279_s25] sm:$0x1]  ;;  %s1008_s16 = sld [smem:[#allocation3 + $0x384]]  ;;  %v216_v37 = vmax.f32 %v211_v25, %v215_v29  ;;  %v361_v46 = vsel %vm360_vm1, %v359_v36, %v341_v32 }
  0x5d   :  { %v175_v20 = vld [vmem:[%s1130_s7] sm:$0x1]  ;;  %v276_v30 = vmax.f32 %v271_v23, %v275_v21  ;;  %s289_s10 = scalar_lea.vmem %s1066_s1, %s952_s15  ;;  %s1019_s23 = sld [smem:[#allocation3 + $0x385]] }
  0x5e   :  { %v176_v28 = vmax.f32 %v171_v14, %v175_v20  ;;  %v285_v31 = vld [vmem:[%s284_s20] sm:$0x1]  ;;  %s300_s22 = scalar_lea.vmem %s1066_s1, %s969_s3  ;;  %s1025_s7 = sld [smem:[#allocation3 + $0x386]]  ;;  %v347_v52 = vrot.slane %v216_v37, 4 }
  0x5f   :  { %v281_v34 = vmax.f32 %v276_v30, %v280_v27  ;;  %v301_v35 = vld [vmem:[%s300_s22] sm:$0x1]  ;;  %s304_s15 = scalar_lea.vmem %s1066_s1, %s980_s6  ;;  %s1031_s14 = sld [smem:[#allocation3 + $0x387]] }
  0x60   :  { %v255_v38 = vld [vmem:[%s254_s21] sm:$0x1]  ;;  %s294_s25 = scalar_lea.vmem %s1066_s1, %s963_s28  ;;  %s309_s20 = scalar_lea.vmem %s1066_s1, %s991_s17  ;;  %v344_v44 = vrot.slane %v176_v28, 5 }
  0x61   :  { %v290_v39 = vld [vmem:[%s289_s10] sm:$0x1]  ;;  %v286_v41 = vmax.f32 %v281_v34, %v285_v31  ;;  %s314_s13 = scalar_lea.vmem %s1066_s1, %s997_s11  ;;  %v256_v47 = vmax.f32 %v251_v33, %v255_v38  ;;  %s1131_s9 = sld [smem:[#allocation17_spill]] }
  0x62   :  { %v305_v40 = vld [vmem:[%s304_s15] sm:$0x1]  ;;  %s319_s28 = scalar_lea.vmem %s1066_s1, %s1008_s16  ;;  %v363_v54 = vsel %vm362_vm2, %v361_v46, %v344_v44 }
  0x63   :  { %v306_v42 = vmax.f32 %v301_v35, %v305_v40  ;;  %v310_v43 = vld [vmem:[%s309_s20] sm:$0x1]  ;;  %v291_v48 = vmax.f32 %v286_v41, %v290_v39  ;;  %s324_s12 = scalar_lea.vmem %s1066_s1, %s1019_s23  ;;  %v350_v58 = vrot.slane %v256_v47, 3  ;;  %v365_v60 = vsel %vm364_vm3, %v363_v54, %v347_v52 }
  0x64   :  { %v315_v45 = vld [vmem:[%s314_s13] sm:$0x1]  ;;  %s329_s30 = scalar_lea.vmem %s1066_s1, %s1025_s7 }
  0x65   :  { %v295_v49 = vld [vmem:[%s294_s25] sm:$0x1]  ;;  %v311_v50 = vmax.f32 %v306_v42, %v310_v43  ;;  %s334_s10 = scalar_lea.vmem %s1066_s1, %s1031_s14  ;;  %v367_v1 = vsel %vm366_vm4, %v365_v60, %v350_v58 }
  0x66   :  { %v320_v51 = vld [vmem:[%s319_s28] sm:$0x1]  ;;  %v296_v55 = vmax.f32 %v291_v48, %v295_v49 }
  0x67   :  { %v316_v53 = vmax.f32 %v311_v50, %v315_v45  ;;  %v325_v56 = vld [vmem:[%s324_s12] sm:$0x1] }
  0x68   :  { %v330_v59 = vld [vmem:[%s329_s30] sm:$0x1]  ;;  %v353_v63 = vrot.slane %v296_v55, 2 }
  0x69   :  { %v321_v57 = vmax.f32 %v316_v53, %v320_v51  ;;  %v335_v62 = vld [vmem:[%s334_s10] sm:$0x1] }
  0x6a   :  { %v369_v3 = vsel %vm368_vm5, %v367_v1, %v353_v63 }
  0x6b   :  { %v326_v61 = vmax.f32 %v321_v57, %v325_v56 }
  0x6d   :  { %v331_v0 = vmax.f32 %v326_v61, %v330_v59 }
  0x6f   :  { %v336_v2 = vmax.f32 %v331_v0, %v335_v62 }
  0x71   :  { %v356_v4 = vrot.slane %v336_v2, 1 }
  0x73   :  { %v371_v5 = vsel %vm370_vm6, %v369_v3, %v356_v4 }
  0x74   :  { %372 = vst [vmem:[%s1131_s9] sm:$0xff] %v371_v5 }

</bundles_post_ra>
